<compile_context>
chip_gen: v5e
topology: v5e:2x2
jax: 0.10.0
libtpu: 0.0.40
codegen_flags: <defaults>
</compile_context>

<pallas_src>
import math

import jax
import jax.numpy as jnp
from jax.experimental import pallas as pl
from jax.experimental.pallas import tpu as pltpu


def _centered_dft_matrix(n: int) -> jnp.ndarray:
    """M (n,n) complex64 such that M @ x == fftshift(fft(ifftshift(x), norm='ortho'))."""
    eye = jnp.eye(n, dtype=jnp.complex64)
    m = jnp.fft.ifftshift(eye, axes=0)
    m = jnp.fft.fft(m, axis=0, norm="ortho")
    m = jnp.fft.fftshift(m, axes=0)
    return m


def _fft2c_kernel(mh_ref, bw_ref, x_ref, o_ref):
    """One grid step: TB images, centered 2-D ortho DFT, interleaved re/im layout.

    mh_ref : (2, H, H)   [Re(M_H), Im(M_H)]
    bw_ref : (2W, 2W)    real embedding of M_W^T acting on interleaved columns
    x_ref  : (TB*H, 2W)  input slab in natural torch layout (re/im interleaved)
    o_ref  : (TB*H, 2W)  output slab in the same interleaved layout
    """
    f32 = jnp.float32
    tbh, w2 = x_ref.shape
    h = mh_ref.shape[1]
    tb = tbh // h

    # ---- Stage 1: W transform.  One fused MXU matmul over the whole slab; the
    # real embedding consumes and produces interleaved (re, im) columns, so no
    # de-interleave of the input is ever needed.
    s = jnp.dot(x_ref[...], bw_ref[...], preferred_element_type=f32)   # (tbh, 2W)

    # Companion slab for the complex left-multiply: per column pair
    # (re, im) -> (-im, re), i.e. multiply-by-i in interleaved form.
    col = jax.lax.broadcasted_iota(jnp.int32, (tbh, w2), 1)
    is_re = (col % 2) == 0
    s_next = jnp.roll(s, -1, axis=1)        # column c <- c + 1
    s_prev = jnp.roll(s, 1, axis=1)         # column c <- c - 1
    s_swap = jnp.where(is_re, -s_next, s_prev)

    op_dt = mh_ref.dtype
    s_op = s.astype(op_dt)
    s_swap_op = s_swap.astype(op_dt)
    ar = mh_ref[0]
    ai = mh_ref[1]

    # ---- Stage 2: H transform (contracts over H), one image at a time.
    # Plain 2-D dots keep the (H, H) DFT matrix un-broadcast (no per-image
    # copies of the constants in VMEM).  tb is small and static -> unrolled.
    for b in range(tb):
        lo = b * h
        t = s_op[lo:lo + h, :]
        tw = s_swap_op[lo:lo + h, :]
        y = (jnp.dot(ar, t, preferred_element_type=f32)
             + jnp.dot(ai, tw, preferred_element_type=f32))
        o_ref[lo:lo + h, :] = y.astype(o_ref.dtype)   # already interleaved


def _pick_tb(n: int, H: int, W: int, op_itemsize: int, budget: int) -> int:
    """Images per grid step under the VMEM budget; prefers >=4, even grid steps."""
    # per-image bytes: input block (dbl-buf) + f32 output block (dbl-buf)
    # + f32 intermediates (s, s_swap, roll temporaries / slack).
    per_img = (H * 2 * W) * (2 * op_itemsize + 2 * 4 + 4 * 4)
    const_bytes = (4 * W * W + 2 * H * H) * op_itemsize   # single-buffered consts
    max_tb = max(1, min(n // 4, 16)) if n >= 4 else n

    def legal(tb):
        return n % tb == 0 and ((tb * H) % 8 == 0 or tb == n)

    for want_even in (True, False):
        for tb in range(max_tb, 0, -1):
            if not legal(tb):
                continue
            if want_even and (n // tb) % 2 != 0:
                continue
            if const_bytes + tb * per_img <= budget:
                return tb
    # Fallback: smallest legal tile even if it overshoots the soft budget.
    for tb in range(1, n + 1):
        if legal(tb):
            return tb
    return n


def _single_buffered_spec(block_shape, index_map):
    """Constant blocks never change across the grid: skip double-buffering."""
    try:
        return pl.BlockSpec(block_shape, index_map, pipeline_mode=pl.Buffered(1))
    except TypeError:                       # older signature without pipeline_mode
        return pl.BlockSpec(block_shape, index_map)


def fft2c_pallas(x: jnp.ndarray, *, use_bf16_operands: bool = False) -> jnp.ndarray:
    """x: (..., H, W, 2) float32 -> (..., H, W, 2) float32 (centered ortho 2-D FFT)."""
    *batch, H, W, two = x.shape
    assert two == 2, "last dim must hold (real, imag)"
    n = math.prod(batch) if batch else 1

    # bf16 operands (f32 accumulation) are the fast path on v6e/v7x MXUs; kept
    # off by default for tight accuracy.
    op_dtype = jnp.bfloat16 if use_bf16_operands else jnp.float32
    itemsize = jnp.dtype(op_dtype).itemsize

    # Zero-touch input: the natural (..., H, W, 2) layout IS the interleaved
    # (n*H, 2W) slab — pure reshape, no de-interleave HBM pass.
    x2 = x.astype(jnp.float32).reshape(n * H, 2 * W).astype(op_dtype)

    # Stage-1 constant: real embedding of M_W^T for interleaved columns.
    #   Bfull[2k, 2j] = Br[k,j]; Bfull[2k+1, 2j] = -Bi[k,j]
    #   Bfull[2k, 2j+1] = Bi[k,j]; Bfull[2k+1, 2j+1] = Br[k,j]
    mw_t = _centered_dft_matrix(W).T                      # (W, W) complex
    br = jnp.real(mw_t).astype(jnp.float32)
    bi = jnp.imag(mw_t).astype(jnp.float32)
    bw = jnp.stack([jnp.stack([br, bi], axis=-1),
                    jnp.stack([-bi, br], axis=-1)], axis=1)
    bw = bw.reshape(2 * W, 2 * W).astype(op_dtype)        # (2W, 2W)

    # Stage-2 constant: planar real/imag of M_H.
    mh_c = _centered_dft_matrix(H)
    mh = jnp.stack([jnp.real(mh_c), jnp.imag(mh_c)], axis=0)
    mh = mh.astype(jnp.float32).astype(op_dtype)          # (2, H, H)

    # Generation-aware VMEM budget (v5e/v6e: 128 MiB, v7x: 64 MiB physical).
    try:
        vmem_cap = int(pltpu.get_tpu_info().vmem_capacity_bytes)
    except Exception:
        vmem_cap = 64 * 1024 * 1024                       # conservative (v7x)
    budget = int(vmem_cap * 0.70)
    vmem_limit = int(vmem_cap * 0.90)

    tb = _pick_tb(n, H, W, itemsize, budget)
    grid = (n // tb,)

    macs = 4 * n * H * W * (H + W)                        # embedded + 2-dot form
    cost = pl.CostEstimate(
        flops=2 * macs,
        transcendentals=0,
        bytes_accessed=(2 * n * H * W * itemsize          # input slab
                        + 2 * n * H * W * 4               # f32 output slab
                        + (4 * W * W + 2 * H * H) * itemsize))  # constants

    out = pl.pallas_call(
        _fft2c_kernel,
        out_shape=jax.ShapeDtypeStruct((n * H, 2 * W), jnp.float32),
        grid_spec=pltpu.PrefetchScalarGridSpec(
            num_scalar_prefetch=0,
            grid=grid,
            in_specs=[
                _single_buffered_spec((2, H, H), lambda b: (0, 0, 0)),     # M_H
                _single_buffered_spec((2 * W, 2 * W), lambda b: (0, 0)),   # emb(M_W^T)
                pl.BlockSpec((tb * H, 2 * W), lambda b: (b, 0)),           # x slab
            ],
            out_specs=pl.BlockSpec((tb * H, 2 * W), lambda b: (b, 0)),
        ),
        compiler_params=pltpu.CompilerParams(
            dimension_semantics=("parallel",),
            vmem_limit_bytes=vmem_limit),
        cost_estimate=cost,
    )(mh, bw, x2)

    # Output is already interleaved (re, im) along the lane axis: free reshape.
    return out.reshape(*batch, H, W, 2)


if __name__ == "__main__":
    key = jax.random.PRNGKey(0)
    B, C, H, W = 2, 4, 16, 16
    x = jax.random.normal(key, (B, C, H, W, 2), dtype=jnp.float32)

    out = jax.block_until_ready(fft2c_pallas(x))

    # Reference: plain JAX centered ortho 2-D FFT (== torch fastMRI fft2c).
    xc = x[..., 0] + 1j * x[..., 1]
    ref_c = jnp.fft.fftshift(
        jnp.fft.fft2(jnp.fft.ifftshift(xc, axes=(-2, -1)),
                     axes=(-2, -1), norm="ortho"),
        axes=(-2, -1))
    ref = jnp.stack([jnp.real(ref_c), jnp.imag(ref_c)], axis=-1).astype(jnp.float32)

    err = float(jnp.max(jnp.abs(out - ref)))
    assert out.shape == x.shape and out.dtype == jnp.float32
    assert err < 2e-3, f"max abs error too large: {err}"
    print("KERNEL_OK")
</pallas_src>

<mosaic_0001>
module attributes {stable_mosaic.version = 11 : i64} {
  func.func @_fft2c_kernel(%arg0: i32, %arg1: memref<2x16x16xf32, #tpu.memory_space<vmem>>, %arg2: memref<32x32xf32, #tpu.memory_space<vmem>>, %arg3: memref<32x32xf32, #tpu.memory_space<vmem>>, %arg4: memref<32x32xf32, #tpu.memory_space<vmem>>) attributes {dimension_semantics = [#tpu.dimension_semantics<parallel>], iteration_bounds = array<i64: 4>, scalar_prefetch = 0 : i64, scratch_operands = 0 : i64, tpu.core_type = #tpu.core_type<tc>, window_params = [{pipeline_mode = #tpu.pipeline_mode<synchronous>, transform_indices = @transform_0, window_bounds = array<i64: 2, 16, 16>}, {pipeline_mode = #tpu.pipeline_mode<synchronous>, transform_indices = @transform_1, window_bounds = array<i64: 32, 32>}, {transform_indices = @transform_2, window_bounds = array<i64: 32, 32>}, {transform_indices = @transform_3, window_bounds = array<i64: 32, 32>}]} {
    %c0 = arith.constant 0 : index
    %c0_0 = arith.constant 0 : index
    %0 = vector.load %arg3[%c0, %c0_0] : memref<32x32xf32, #tpu.memory_space<vmem>>, vector<32x32xf32>
    %c0_1 = arith.constant 0 : index
    %c0_2 = arith.constant 0 : index
    %1 = vector.load %arg2[%c0_1, %c0_2] : memref<32x32xf32, #tpu.memory_space<vmem>>, vector<32x32xf32>
    %cst = arith.constant dense<0.000000e+00> : vector<32x32xf32>
    %2 = tpu.matmul %0, %1, %cst {dimension_numbers = #tpu.dot_dimension_numbers<[1], [0], [0], [1], [0, 0, 1, 1], [], []>} : vector<32x32xf32>, vector<32x32xf32>, vector<32x32xf32> -> vector<32x32xf32>
    %3 = tpu.iota {dimensions = array<i32: 1>} : vector<32x32xi32>
    %c2_i32 = arith.constant 2 : i32
    %c0_i32 = arith.constant 0 : i32
    %4 = arith.cmpi eq, %c2_i32, %c0_i32 : i32
    %c1_i32 = arith.constant 1 : i32
    %5 = arith.select %4, %c1_i32, %c2_i32 : i32
    %6 = vector.broadcast %5 : i32 to vector<32x32xi32>
    %7 = arith.remsi %3, %6 : vector<32x32xi32>
    %c0_i32_3 = arith.constant 0 : i32
    %8 = vector.broadcast %c0_i32_3 : i32 to vector<32x32xi32>
    %9 = arith.cmpi ne, %7, %8 : vector<32x32xi32>
    %c0_i32_4 = arith.constant 0 : i32
    %10 = vector.broadcast %c0_i32_4 : i32 to vector<32x32xi32>
    %11 = arith.cmpi slt, %7, %10 : vector<32x32xi32>
    %c0_i32_5 = arith.constant 0 : i32
    %12 = arith.cmpi slt, %5, %c0_i32_5 : i32
    %13 = vector.broadcast %12 : i1 to vector<32x32xi1>
    %14 = vector.broadcast %13 : vector<32x32xi1> to vector<32x32xi1>
    %15 = arith.xori %11, %14 : vector<32x32xi1>
    %16 = arith.andi %15, %9 : vector<32x32xi1>
    %17 = vector.broadcast %5 : i32 to vector<32x32xi32>
    %18 = arith.addi %7, %17 : vector<32x32xi32>
    %19 = arith.select %16, %18, %7 : vector<32x32xi1>, vector<32x32xi32>
    %c0_i32_6 = arith.constant 0 : i32
    %20 = vector.broadcast %c0_i32_6 : i32 to vector<32x32xi32>
    %21 = arith.cmpi eq, %19, %20 : vector<32x32xi32>
    %22 = vector.extract_strided_slice %2 {offsets = [0, 1], sizes = [32, 31], strides = [1, 1]} : vector<32x32xf32> to vector<32x31xf32>
    %23 = vector.extract_strided_slice %2 {offsets = [0, 0], sizes = [32, 1], strides = [1, 1]} : vector<32x32xf32> to vector<32x1xf32>
    %24 = tpu.concatenate %22, %23 in 1 : vector<32x31xf32>, vector<32x1xf32> -> vector<32x32xf32>
    %25 = vector.extract_strided_slice %2 {offsets = [0, 31], sizes = [32, 1], strides = [1, 1]} : vector<32x32xf32> to vector<32x1xf32>
    %26 = vector.extract_strided_slice %2 {offsets = [0, 0], sizes = [32, 31], strides = [1, 1]} : vector<32x32xf32> to vector<32x31xf32>
    %27 = tpu.concatenate %25, %26 in 1 : vector<32x1xf32>, vector<32x31xf32> -> vector<32x32xf32>
    %cst_7 = arith.constant 0.000000e+00 : f32
    %28 = vector.broadcast %cst_7 : f32 to vector<32x32xf32>
    %29 = arith.subf %28, %24 : vector<32x32xf32>
    %30 = arith.select %21, %29, %27 : vector<32x32xi1>, vector<32x32xf32>
    %c0_8 = arith.constant 0 : index
    %c0_9 = arith.constant 0 : index
    %c0_10 = arith.constant 0 : index
    %31 = vector.load %arg1[%c0_8, %c0_9, %c0_10] : memref<2x16x16xf32, #tpu.memory_space<vmem>>, vector<1x16x16xf32>
    %32 = vector.shape_cast %31 : vector<1x16x16xf32> to vector<16x16xf32>
    %c1 = arith.constant 1 : index
    %c0_11 = arith.constant 0 : index
    %c0_12 = arith.constant 0 : index
    %33 = vector.load %arg1[%c1, %c0_11, %c0_12] : memref<2x16x16xf32, #tpu.memory_space<vmem>>, vector<1x16x16xf32>
    %34 = vector.shape_cast %33 : vector<1x16x16xf32> to vector<16x16xf32>
    %35 = vector.extract_strided_slice %2 {offsets = [0, 0], sizes = [16, 32], strides = [1, 1]} : vector<32x32xf32> to vector<16x32xf32>
    %36 = vector.extract_strided_slice %30 {offsets = [0, 0], sizes = [16, 32], strides = [1, 1]} : vector<32x32xf32> to vector<16x32xf32>
    %cst_13 = arith.constant dense<0.000000e+00> : vector<16x32xf32>
    %37 = tpu.matmul %32, %35, %cst_13 {dimension_numbers = #tpu.dot_dimension_numbers<[1], [0], [0], [1], [0, 0, 1, 1], [], []>} : vector<16x16xf32>, vector<16x32xf32>, vector<16x32xf32> -> vector<16x32xf32>
    %cst_14 = arith.constant dense<0.000000e+00> : vector<16x32xf32>
    %38 = tpu.matmul %34, %36, %cst_14 {dimension_numbers = #tpu.dot_dimension_numbers<[1], [0], [0], [1], [0, 0, 1, 1], [], []>} : vector<16x16xf32>, vector<16x32xf32>, vector<16x32xf32> -> vector<16x32xf32>
    %39 = arith.addf %37, %38 : vector<16x32xf32>
    %c0_15 = arith.constant 0 : index
    %c0_16 = arith.constant 0 : index
    %40 = vector.load %arg4[%c0_15, %c0_16] : memref<32x32xf32, #tpu.memory_space<vmem>>, vector<16x32xf32>
    tpu.vector_store %arg4[%c0_15, %c0_16], %39 {strides = array<i32>} : memref<32x32xf32, #tpu.memory_space<vmem>>, vector<16x32xf32>,
    %41 = vector.extract_strided_slice %2 {offsets = [16, 0], sizes = [16, 32], strides = [1, 1]} : vector<32x32xf32> to vector<16x32xf32>
    %42 = vector.extract_strided_slice %30 {offsets = [16, 0], sizes = [16, 32], strides = [1, 1]} : vector<32x32xf32> to vector<16x32xf32>
    %cst_17 = arith.constant dense<0.000000e+00> : vector<16x32xf32>
    %43 = tpu.matmul %32, %41, %cst_17 {dimension_numbers = #tpu.dot_dimension_numbers<[1], [0], [0], [1], [0, 0, 1, 1], [], []>} : vector<16x16xf32>, vector<16x32xf32>, vector<16x32xf32> -> vector<16x32xf32>
    %cst_18 = arith.constant dense<0.000000e+00> : vector<16x32xf32>
    %44 = tpu.matmul %34, %42, %cst_18 {dimension_numbers = #tpu.dot_dimension_numbers<[1], [0], [0], [1], [0, 0, 1, 1], [], []>} : vector<16x16xf32>, vector<16x32xf32>, vector<16x32xf32> -> vector<16x32xf32>
    %45 = arith.addf %43, %44 : vector<16x32xf32>
    %c16 = arith.constant 16 : index
    %c0_19 = arith.constant 0 : index
    %46 = vector.load %arg4[%c16, %c0_19] : memref<32x32xf32, #tpu.memory_space<vmem>>, vector<16x32xf32>
    tpu.vector_store %arg4[%c16, %c0_19], %45 {strides = array<i32>} : memref<32x32xf32, #tpu.memory_space<vmem>>, vector<16x32xf32>,
    return
  }
  func.func @transform_0(%arg0: i32) -> (i32, i32, i32) {
    %c0_i32 = arith.constant 0 : i32
    %c0_i32_0 = arith.constant 0 : i32
    %c0_i32_1 = arith.constant 0 : i32
    %c0_i32_2 = arith.constant 0 : i32
    return %c0_i32, %c0_i32_0, %c0_i32_1 : i32, i32, i32
  }
  func.func @transform_1(%arg0: i32) -> (i32, i32) {
    %c0_i32 = arith.constant 0 : i32
    %c0_i32_0 = arith.constant 0 : i32
    %c0_i32_1 = arith.constant 0 : i32
    return %c0_i32, %c0_i32_0 : i32, i32
  }
  func.func @transform_2(%arg0: i32) -> (i32, i32) {
    %c0_i32 = arith.constant 0 : i32
    %c0_i32_0 = arith.constant 0 : i32
    return %arg0, %c0_i32 : i32, i32
  }
  func.func @transform_3(%arg0: i32) -> (i32, i32) {
    %c0_i32 = arith.constant 0 : i32
    %c0_i32_0 = arith.constant 0 : i32
    return %arg0, %c0_i32 : i32, i32
  }
}

</mosaic_0001>

<bundles_post_ra>
// kernel: tpu_custom_call.1
= control target key start
LH: loop header
LB: loop body
LE: loop exit
PB: predicated region body
PF: predicated region fallthrough
CT: control target
= control target key end

     0   :  { %s574_s12 = smov 0   ;;  %s658_s0 = inlined_call_operand.vmem [shape: f32[2,16,16], index: 0, kind: input, shape index: {}]   ;;  %s659_s1 = inlined_call_operand.vmem [shape: f32[32,32], index: 1, kind: input, shape index: {}]   ;;  %s660_s2 = inlined_call_operand.vmem [shape: f32[128,32], index: 2, kind: input, shape index: {}]   ;;  %s661_s3 = inlined_call_operand.vmem [shape: f32[128,32], index: 3, kind: output, shape index: {}]  }
   0x1 LB: > { %s479_s13 = sadd.s32 4294967295, %s548_s12   ;;  %p483_p0 = scmp.ge.s32.totalorder %s548_s12, 1  ;;  %s548_s12 = sphi %s574_s12, %s13_s12  }
   0x2   : > { %p138_p1 = scmp.lt.s32.totalorder %s548_s12, 5 }
   0x4   : > { %p139_p2 = pnand %p483_p0, %p138_p1 }
   0x5   : > { %s484_s18 = sshll.u32 (!%p139_p2), %s479_s13, 2  ;;  %s550_s27 = smov (!%p139_p2), 127  }
   0x6   : > { %142 = sbr.rel (%p139_p2) target bundleno = 440 (0x1b8), region = 32  ;;  %p163_p3 = scmp.lt.s32.totalorder (!%p139_p2), %s484_s18, 15 }
   0x7   : > { %s551_s28 = smov (!%p139_p2), 31   ;;  %s552_s29 = smov (!%p139_p2), 97  }
   0x8   : > { %s553_s30 = smov (!%p139_p2), 1  }
   0xb   : > { %v181_v0 = vld [vmem:[%s659_s1 + $0x18] sm:$0xff]  ;;  %v180_v1 = vld [vmem:[%s659_s1 + $0x10] sm:$0xff]  ;;  %v179_v2 = vld [vmem:[%s659_s1 + $0x8] sm:$0xff]  ;;  %s665_s18 = smov (!%p163_p3, %s484_s18), 15  ;;  %vm182_vm0 = vcmask 261120   ;;  %vm314_vm1 = vcmask 130048   ;;  %v224_v19 = vlaneseq }
   0xc   : > { %207 = vmatpush.msra.mxu0 %v181_v0  ;;  %504 = vmatpush.msra.mxu2 %v181_v0  ;;  %v178_v3 = vld [vmem:[%s659_s1] sm:$0xff]  ;;  %s485_s23 = sshll.u32 %s665_s18, 3  ;;  %v310_v16 = vld [vmem:[%s658_s0 + $0x8] sm:$0xff]  ;;  %vm267_vm2 = vcmask 252928   ;;  %vm296_vm3 = vcmask 7168   ;;  %v493_v39 = vld [vmem:[%s658_s0 + $0x18] sm:$0xff] }
   0xd   : > { %s166_s26 = scalar_lea.vmem %s660_s2, %s485_s23  ;;  %v309_v14 = vld [vmem:[%s658_s0] sm:$0xff]  ;;  %v225_v22 = vand.u32 127, %v224_v19  ;;  %v492_v42 = vld [vmem:[%s658_s0 + $0x10] sm:$0xff]  ;;  %s172_s15 = scalar_lea.vmem %s661_s3, %s485_s23 }
   0xe   : > { %208 = vmatpush.msra.mxu0 %v180_v1  ;;  %505 = vmatpush.msra.mxu2 %v180_v1  ;;  %v174_v4 = vld [vmem:[%s166_s26] sm:$0xff]  ;;  %v177_v5 = vld [vmem:[%s166_s26 + $0x18] sm:$0xff]  ;;  %v175_v6 = vld [vmem:[%s166_s26 + $0x8] sm:$0xff] }
   0xf   : > { %v176_v7 = vld [vmem:[%s166_s26 + $0x10] sm:$0xff]  ;;  %v230_v26 = vand.u32 1, %v225_v22 }
  0x10   : > { %209 = vmatpush.msra.mxu0 %v179_v2  ;;  %506 = vmatpush.msra.mxu2 %v179_v2 }
  0x11   : > { %vm616_vm4 = vcmp.eq.s32.totalorder %v230_v26, 0 }
  0x12   : > { %210 = vmatpush.msra.mxu0 %v178_v3  ;;  %507 = vmatpush.msra.mxu2 %v178_v3 }
  0x13   : > { %488 = vmatmul.msk.f32.vlgmr.msra.gmra.mxu0 %vm182_vm0, %v174_v4  ;;  %491 = vmatmul.msk.f32.vlgmr.msra.gmra.mxu2 %vm182_vm0, %v177_v5 }
  0x1b   : > { %489 = vmatmul.msk.f32.gmra.mxu0 %vm182_vm0, %v175_v6 }
  0x23   : > { %490 = vmatmul.msk.f32.gmra.mxu0 %vm182_vm0, %v176_v7 }
  0x90   : > { %v212_v8 = vpop.f32.mrf.mxu0 }
  0x91   : > { %243 = vrot.lane.b32.xlu1 %v212_v8, %s550_s27 }
  0x96   : > { %v221_v11 = vpop.f32.mrf.mxu2 }
  0x98   : > { %v215_v9 = vpop.f32.mrf.mxu0 }
  0x99   : > { %255 = vrot.lane.b32.xlu1 %v212_v8, %s551_s28  ;;  %245 = vrot.lane.b32.xlu0 %v215_v9, %s550_s27  ;;  %v522_v10 = vpack.i.bf16 %v212_v8, %v215_v9 }
  0x9a   : > { %364 = vmatpush.msrb.mxu2 %v215_v9 }
  0x9b   : > { %523 = vrot.lane.b32.xlu2 %v522_v10, %s552_s29 }
  0x9c   : > { %365 = vmatpush.msrb.mxu2 %v212_v8 }
  0x9d   : > { %496 = vmatmul.msk.f32.vlgmr.msrb.gmra.mxu2 %vm314_vm1, %v309_v14 }
  0xa0   : > { %v218_v12 = vpop.f32.mrf.mxu0 }
  0xa1   : > { %261 = vrot.lane.b32.xlu1 %v221_v11, %s551_s28  ;;  %257 = vrot.lane.b32.xlu0 %v215_v9, %s551_s28  ;;  %v532_v13 = vpack.i.bf16 %v218_v12, %v221_v11 }
  0xa3   : > { %528 = vrot.lane.b32.xlu2 %v522_v10, %s553_s30 }
  0xa5   : > { %497 = vmatmul.msk.f32.gmra.mxu2 %vm314_vm1, %v310_v16 }
  0xa9   : > { %249 = vrot.lane.b32.xlu0 %v221_v11, %s550_s27  ;;  %533 = vrot.lane.b32.xlu1 %v532_v13, %s552_s29 }
  0xab   : > { %247 = vrot.lane.b32.xlu2 %v218_v12, %s550_s27 }
  0xb1   : > { %259 = vrot.lane.b32.xlu0 %v218_v12, %s551_s28 }
  0xb3   : > { %538 = vrot.lane.b32.xlu2 %v532_v13, %s553_s30 }
  0xf5   : > { %v524_v15 = vpop.permute.xlu2 %523 }
  0xf6   : > { %v525_v29 = vunpack.i.l.bf16 %v524_v15  ;;  %v526_v34 = vunpack.i.h.bf16 %v524_v15 }
  0xfd   : > { %v529_v18 = vpop.permute.xlu2 %528 }
  0xfe   : > { %v530_v24 = vunpack.i.l.bf16 %v529_v18  ;;  %v531_v30 = vunpack.i.h.bf16 %v529_v18 }
 0x100   : > { %v298_v36 = vsel %vm296_vm3, %v525_v29, %v530_v24  ;;  %v297_v38 = vsel %vm296_vm3, %v526_v34, %v531_v30 }
 0x103   : > { %v244_v17 = vpop.permute.xlu1 %243 }
 0x105   : > { %v248_v23 = vpop.permute.xlu2 %247 }
 0x10b   : > { %v256_v20 = vpop.permute.xlu1 %255  ;;  %v246_v21 = vpop.permute.xlu0 %245 }
 0x10c   : > { %v268_v25 = vsel %vm267_vm2, %v244_v17, %v256_v20 }
 0x10d   : > { %v301_v32 = vsub.f32 0.0, %v268_v25  ;;  %v539_v40 = vpop.permute.xlu2 %538 }
 0x10e   : > { %v540_v45 = vunpack.i.l.bf16 %v539_v40  ;;  %v541_v53 = vunpack.i.h.bf16 %v539_v40 }
 0x10f   : > { %v305_v41 = vsel %vm616_vm4, %v301_v32, %v297_v38 }
 0x113   : > { %v262_v27 = vpop.permute.xlu1 %261  ;;  %v258_v28 = vpop.permute.xlu0 %257 }
 0x114   : > { %v269_v31 = vsel %vm267_vm2, %v246_v21, %v258_v28 }
 0x115   : > { %v302_v33 = vsub.f32 0.0, %v269_v31 }
 0x117   : > { %v306_v37 = vsel %vm616_vm4, %v302_v33, %v298_v36 }
 0x118   : > { %335 = vmatpush.msra.mxu1 %v306_v37  ;;  %508 = vmatpush.msra.mxu3 %v306_v37 }
 0x11a   : > { %336 = vmatpush.msra.mxu1 %v305_v41  ;;  %509 = vmatpush.msra.mxu3 %v305_v41 }
 0x11b   : > { %v250_v43 = vpop.permute.xlu0 %249  ;;  %v534_v44 = vpop.permute.xlu1 %533  ;;  %495 = vmatmul.msk.f32.vlgmr.msra.gmra.mxu3 %vm314_vm1, %v493_v39  ;;  %494 = vmatmul.msk.f32.vlgmr.msra.gmra.mxu1 %vm314_vm1, %v492_v42 }
 0x11c   : > { %412 = vmatpush.msrb.mxu1 %v221_v11  ;;  %v271_v46 = vsel %vm267_vm2, %v250_v43, %v262_v27  ;;  %v535_v47 = vunpack.i.l.bf16 %v534_v44  ;;  %v536_v51 = vunpack.i.h.bf16 %v534_v44 }
 0x11d   : > { %v304_v48 = vsub.f32 0.0, %v271_v46 }
 0x11e   : > { %413 = vmatpush.msrb.mxu1 %v218_v12  ;;  %v300_v49 = vsel %vm296_vm3, %v535_v47, %v540_v45  ;;  %v299_v56 = vsel %vm296_vm3, %v536_v51, %v541_v53 }
 0x11f   : > { %v308_v50 = vsel %vm616_vm4, %v304_v48, %v300_v49 }
 0x120   : > { %389 = vmatpush.msrb.mxu3 %v308_v50  ;;  %v367_v58 = vpop.f32.mrf.mxu2 }
 0x123   : > { %v260_v52 = vpop.permute.xlu0 %259  ;;  %500 = vmatmul.msk.f32.vlgmr.msrb.gmra.mxu1 %vm314_vm1, %v309_v14 }
 0x124   : > { %v270_v54 = vsel %vm267_vm2, %v248_v23, %v260_v52 }
 0x125   : > { %v303_v55 = vsub.f32 0.0, %v270_v54 }
 0x127   : > { %v307_v57 = vsel %vm616_vm4, %v303_v55, %v299_v56 }
 0x128   : > { %390 = vmatpush.msrb.mxu3 %v307_v57  ;;  %v370_v61 = vpop.f32.mrf.mxu2 }
 0x129   : > { %498 = vmatmul.msk.f32.vlgmr.msrb.gmra.mxu3 %vm314_vm1, %v492_v42 }
 0x12b   : > { %501 = vmatmul.msk.f32.gmra.mxu1 %vm314_vm1, %v310_v16 }
 0x131   : > { %499 = vmatmul.msk.f32.gmra.mxu3 %vm314_vm1, %v493_v39 }
 0x198   : > { %v338_v59 = vpop.f32.mrf.mxu1 }
 0x199   : > { %v368_v60 = vadd.f32 %v367_v58, %v338_v59 }
 0x19b   : > { %373 = vst.msk [vmem:[%s172_s15] sm:$0xff] %vm182_vm0, %v368_v60 }
 0x19e   : > { %v341_v62 = vpop.f32.mrf.mxu3 }
 0x19f   : > { %v371_v63 = vadd.f32 %v370_v61, %v341_v62 }
 0x1a0   : > { %v415_v0 = vpop.f32.mrf.mxu1 }
 0x1a1   : > { %374 = vst.msk [vmem:[%s172_s15 + $0x8] sm:$0xff] %vm182_vm0, %v371_v63 }
 0x1a8   : > { %v418_v3 = vpop.f32.mrf.mxu1 }
 0x1ac   : > { %v392_v1 = vpop.f32.mrf.mxu3 }
 0x1ad   : > { %v416_v2 = vadd.f32 %v415_v0, %v392_v1 }
 0x1af   : > { %421 = vst.msk [vmem:[%s172_s15 + $0x10] sm:$0xff] %vm182_vm0, %v416_v2 }
 0x1b4   : > { %v395_v4 = vpop.f32.mrf.mxu3 }
 0x1b5   : > { %v419_v5 = vadd.f32 %v418_v3, %v395_v4 }
 0x1b7   : > { %422 = vst.msk [vmem:[%s172_s15 + $0x18] sm:$0xff] %vm182_vm0, %v419_v5 }
 0x1b8 PF: > { %s13_s12 = sadd.s32 1, %s548_s12  }
 0x1b9   : > { %p10_p4 = scmp.ge.s32.totalorder %s13_s12, 6  }
 0x1bb   :  { %12 = sbr.rel (!%p10_p4) target bundleno = 1 (0x1), region = 63 }

</bundles_post_ra>
